<compile_context>
chip_gen: v7x
topology: tpu7x:2x2x1
jax: 0.10.0
libtpu: 0.0.40
codegen_flags: <defaults>
</compile_context>

<pallas_src>
import functools

import jax
import jax.numpy as jnp
from jax.experimental import pallas as pl
from jax.experimental.pallas import tpu as pltpu


def _fnn_ap_kernel(n_layers, x_ref, *refs):
    """refs = (w0, b0, w1, b1, ..., w_{L-1}, b_{L-1}, o_ref).

    x_ref:   (d_in, batch_tile)        -- batch on the lane axis
    w_i:     (d_out_i, d_in_i)         -- PyTorch nn.Linear layout, used as-is
    b_i:     (d_out_i, 1)              -- broadcast along lanes
    o_ref:   (d_out_last, batch_tile)
    """
    o_ref = refs[-1]
    param_refs = refs[:-1]

    h = x_ref[...].astype(jnp.float32)                       # (d_in, tile)
    for i in range(n_layers):
        w = param_refs[2 * i][...].astype(jnp.float32)       # (d_out, d_in)
        b = param_refs[2 * i + 1][...].astype(jnp.float32)   # (d_out, 1)
        h = jnp.dot(w, h, preferred_element_type=jnp.float32) + b
        if i < n_layers - 1:
            h = jnp.tanh(h)
        else:
            h = jax.nn.sigmoid(h)
    o_ref[...] = h.astype(o_ref.dtype)


def fnn_ap_forward(x, weights, biases, *, batch_tile=1024, stream_dtype=None):
    """Forward pass of FNN_AP.

    x:          (B, layer_sizes[0])
    weights[i]: (out_i, in_i)   (PyTorch nn.Linear layout)
    biases[i]:  (out_i, 1)
    batch_tile: max rows per grid step (rounded to a multiple of 128).
    stream_dtype: optional narrower dtype (e.g. jnp.bfloat16) for the DMA'd
        operands on v6e/v7x; kernel math stays f32.
    """
    n_layers = len(weights)
    B, d_in = x.shape
    d_out = weights[-1].shape[0]

    # Tile: a multiple of 128 (lane-dense), no larger than needed for B.
    tile = min(int(batch_tile), pl.cdiv(B, 128) * 128)
    tile = max(128, (tile // 128) * 128)
    Bp = pl.cdiv(B, tile) * tile

    # Batch-on-lanes layout: (d_in, Bp), zero-pad the batch tail.
    xt = x.T
    if Bp != B:
        xt = jnp.pad(xt, ((0, 0), (0, Bp - B)))

    params = []
    for w, b in zip(weights, biases):
        params.extend([w, b])

    if stream_dtype is not None:
        xt = xt.astype(stream_dtype)
        params = [p.astype(stream_dtype) for p in params]

    kernel = functools.partial(_fnn_ap_kernel, n_layers)

    in_specs = [pl.BlockSpec((d_in, tile), lambda i: (0, i))]
    for w, b in zip(weights, biases):
        # Full-array blocks, constant index_map -> DMA'd once, stay resident.
        in_specs.append(pl.BlockSpec(w.shape, lambda i: (0, 0)))
        in_specs.append(pl.BlockSpec(b.shape, lambda i: (0, 0)))

    out_spec = pl.BlockSpec((d_out, tile), lambda i: (0, i))

    out_t = pl.pallas_call(
        kernel,
        out_shape=jax.ShapeDtypeStruct((d_out, Bp), x.dtype),
        grid_spec=pltpu.PrefetchScalarGridSpec(
            num_scalar_prefetch=0,
            grid=(Bp // tile,),
            in_specs=in_specs,
            out_specs=out_spec,
        ),
        compiler_params=pltpu.CompilerParams(
            dimension_semantics=("parallel",),
            vmem_limit_bytes=32 * 1024 * 1024,
        ),
    )(xt, *params)

    # Back to (B, d_out); drop padded batch columns.
    return out_t[:, :B].T


def init_params(layer_sizes, key):
    """Deterministic xavier_uniform weights + PyTorch-style uniform biases.

    Weights are kept in PyTorch layout (out, in); biases as (out, 1)."""
    weights, biases = [], []
    for i in range(1, len(layer_sizes)):
        fan_in, fan_out = layer_sizes[i - 1], layer_sizes[i]
        key, kw, kb = jax.random.split(key, 3)
        # xavier_uniform_ (gain=1): U(-a, a), a = sqrt(6 / (fan_in + fan_out))
        a = jnp.sqrt(6.0 / (fan_in + fan_out))
        w_pt = jax.random.uniform(kw, (fan_out, fan_in), jnp.float32, -a, a)
        # nn.Linear default bias: U(-1/sqrt(fan_in), 1/sqrt(fan_in))
        bound = 1.0 / jnp.sqrt(float(fan_in))
        b = jax.random.uniform(kb, (fan_out, 1), jnp.float32, -bound, bound)
        weights.append(w_pt)
        biases.append(b)
    return weights, biases


def fnn_ap_reference(x, weights, biases):
    h = x
    for i in range(len(weights)):
        h = h @ weights[i].T + biases[i].T
        h = jnp.tanh(h) if i < len(weights) - 1 else jax.nn.sigmoid(h)
    return h


if __name__ == "__main__":
    layer_sizes = [16, 32, 32, 8]   # small, consistent with FNN_AP(layer_sizes)
    batch = 64                      # not a multiple of 128 -> exercises padding

    key = jax.random.PRNGKey(0)
    key, kx = jax.random.split(key)
    x = jax.random.normal(kx, (batch, layer_sizes[0]), jnp.float32)

    weights, biases = init_params(layer_sizes, key)

    out = fnn_ap_forward(x, weights, biases)   # f32 streaming (exact tolerance)
    out = jax.block_until_ready(out)

    ref = fnn_ap_reference(x, weights, biases)
    assert out.shape == (batch, layer_sizes[-1])
    assert jnp.allclose(out, ref, atol=1e-5, rtol=1e-5), "mismatch vs reference"

    print("KERNEL_OK")
</pallas_src>

<mosaic_0001>
module attributes {stable_mosaic.version = 11 : i64} {
  func.func @_fnn_ap_kernel(%arg0: i32, %arg1: memref<16x128xf32, #tpu.memory_space<vmem>>, %arg2: memref<32x16xf32, #tpu.memory_space<vmem>>, %arg3: memref<32x1xf32, #tpu.memory_space<vmem>>, %arg4: memref<32x32xf32, #tpu.memory_space<vmem>>, %arg5: memref<32x1xf32, #tpu.memory_space<vmem>>, %arg6: memref<8x32xf32, #tpu.memory_space<vmem>>, %arg7: memref<8x1xf32, #tpu.memory_space<vmem>>, %arg8: memref<8x128xf32, #tpu.memory_space<vmem>>) attributes {dimension_semantics = [#tpu.dimension_semantics<parallel>], iteration_bounds = array<i64: 1>, scalar_prefetch = 0 : i64, scratch_operands = 0 : i64, tpu.core_type = #tpu.core_type<tc>, window_params = [{transform_indices = @transform_0, window_bounds = array<i64: 16, 128>}, {pipeline_mode = #tpu.pipeline_mode<synchronous>, transform_indices = @transform_1, window_bounds = array<i64: 32, 16>}, {pipeline_mode = #tpu.pipeline_mode<synchronous>, transform_indices = @transform_2, window_bounds = array<i64: 32, 1>}, {pipeline_mode = #tpu.pipeline_mode<synchronous>, transform_indices = @transform_3, window_bounds = array<i64: 32, 32>}, {pipeline_mode = #tpu.pipeline_mode<synchronous>, transform_indices = @transform_4, window_bounds = array<i64: 32, 1>}, {pipeline_mode = #tpu.pipeline_mode<synchronous>, transform_indices = @transform_5, window_bounds = array<i64: 8, 32>}, {pipeline_mode = #tpu.pipeline_mode<synchronous>, transform_indices = @transform_6, window_bounds = array<i64: 8, 1>}, {transform_indices = @transform_7, window_bounds = array<i64: 8, 128>}]} {
    %c0 = arith.constant 0 : index
    %c0_0 = arith.constant 0 : index
    %0 = vector.load %arg1[%c0, %c0_0] : memref<16x128xf32, #tpu.memory_space<vmem>>, vector<16x128xf32>
    %c0_1 = arith.constant 0 : index
    %c0_2 = arith.constant 0 : index
    %1 = vector.load %arg2[%c0_1, %c0_2] : memref<32x16xf32, #tpu.memory_space<vmem>>, vector<32x16xf32>
    %c0_3 = arith.constant 0 : index
    %c0_4 = arith.constant 0 : index
    %2 = vector.load %arg3[%c0_3, %c0_4] : memref<32x1xf32, #tpu.memory_space<vmem>>, vector<32x1xf32>
    %cst = arith.constant dense<0.000000e+00> : vector<32x128xf32>
    %3 = tpu.matmul %1, %0, %cst {dimension_numbers = #tpu.dot_dimension_numbers<[1], [0], [0], [1], [0, 0, 1, 1], [], []>} : vector<32x16xf32>, vector<16x128xf32>, vector<32x128xf32> -> vector<32x128xf32>
    %4 = vector.broadcast %2 : vector<32x1xf32> to vector<32x128xf32>
    %5 = arith.addf %3, %4 : vector<32x128xf32>
    %6 = math.tanh %5 : vector<32x128xf32>
    %c0_5 = arith.constant 0 : index
    %c0_6 = arith.constant 0 : index
    %7 = vector.load %arg4[%c0_5, %c0_6] : memref<32x32xf32, #tpu.memory_space<vmem>>, vector<32x32xf32>
    %c0_7 = arith.constant 0 : index
    %c0_8 = arith.constant 0 : index
    %8 = vector.load %arg5[%c0_7, %c0_8] : memref<32x1xf32, #tpu.memory_space<vmem>>, vector<32x1xf32>
    %cst_9 = arith.constant dense<0.000000e+00> : vector<32x128xf32>
    %9 = tpu.matmul %7, %6, %cst_9 {dimension_numbers = #tpu.dot_dimension_numbers<[1], [0], [0], [1], [0, 0, 1, 1], [], []>} : vector<32x32xf32>, vector<32x128xf32>, vector<32x128xf32> -> vector<32x128xf32>
    %10 = vector.broadcast %8 : vector<32x1xf32> to vector<32x128xf32>
    %11 = arith.addf %9, %10 : vector<32x128xf32>
    %12 = math.tanh %11 : vector<32x128xf32>
    %c0_10 = arith.constant 0 : index
    %c0_11 = arith.constant 0 : index
    %13 = vector.load %arg6[%c0_10, %c0_11] : memref<8x32xf32, #tpu.memory_space<vmem>>, vector<8x32xf32>
    %c0_12 = arith.constant 0 : index
    %c0_13 = arith.constant 0 : index
    %14 = vector.load %arg7[%c0_12, %c0_13] : memref<8x1xf32, #tpu.memory_space<vmem>>, vector<8x1xf32>
    %cst_14 = arith.constant dense<0.000000e+00> : vector<8x128xf32>
    %15 = tpu.matmul %13, %12, %cst_14 {dimension_numbers = #tpu.dot_dimension_numbers<[1], [0], [0], [1], [0, 0, 1, 1], [], []>} : vector<8x32xf32>, vector<32x128xf32>, vector<8x128xf32> -> vector<8x128xf32>
    %16 = vector.broadcast %14 : vector<8x1xf32> to vector<8x128xf32>
    %17 = arith.addf %15, %16 : vector<8x128xf32>
    %18 = arith.negf %17 : vector<8x128xf32>
    %19 = math.exp %18 : vector<8x128xf32>
    %cst_15 = arith.constant 1.000000e+00 : f32
    %20 = vector.broadcast %cst_15 : f32 to vector<8x128xf32>
    %21 = arith.addf %20, %19 : vector<8x128xf32>
    %22 = arith.divf %20, %21 : vector<8x128xf32>
    %c0_16 = arith.constant 0 : index
    %c0_17 = arith.constant 0 : index
    %23 = vector.load %arg8[%c0_16, %c0_17] : memref<8x128xf32, #tpu.memory_space<vmem>>, vector<8x128xf32>
    tpu.vector_store %arg8[%c0_16, %c0_17], %22 {strides = array<i32>} : memref<8x128xf32, #tpu.memory_space<vmem>>, vector<8x128xf32>,
    return
  }
  func.func @transform_0(%arg0: i32) -> (i32, i32) {
    %c0_i32 = arith.constant 0 : i32
    %c0_i32_0 = arith.constant 0 : i32
    return %c0_i32, %arg0 : i32, i32
  }
  func.func @transform_1(%arg0: i32) -> (i32, i32) {
    %c0_i32 = arith.constant 0 : i32
    %c0_i32_0 = arith.constant 0 : i32
    %c0_i32_1 = arith.constant 0 : i32
    return %c0_i32, %c0_i32_0 : i32, i32
  }
  func.func @transform_2(%arg0: i32) -> (i32, i32) {
    %c0_i32 = arith.constant 0 : i32
    %c0_i32_0 = arith.constant 0 : i32
    %c0_i32_1 = arith.constant 0 : i32
    return %c0_i32, %c0_i32_0 : i32, i32
  }
  func.func @transform_3(%arg0: i32) -> (i32, i32) {
    %c0_i32 = arith.constant 0 : i32
    %c0_i32_0 = arith.constant 0 : i32
    %c0_i32_1 = arith.constant 0 : i32
    return %c0_i32, %c0_i32_0 : i32, i32
  }
  func.func @transform_4(%arg0: i32) -> (i32, i32) {
    %c0_i32 = arith.constant 0 : i32
    %c0_i32_0 = arith.constant 0 : i32
    %c0_i32_1 = arith.constant 0 : i32
    return %c0_i32, %c0_i32_0 : i32, i32
  }
  func.func @transform_5(%arg0: i32) -> (i32, i32) {
    %c0_i32 = arith.constant 0 : i32
    %c0_i32_0 = arith.constant 0 : i32
    %c0_i32_1 = arith.constant 0 : i32
    return %c0_i32, %c0_i32_0 : i32, i32
  }
  func.func @transform_6(%arg0: i32) -> (i32, i32) {
    %c0_i32 = arith.constant 0 : i32
    %c0_i32_0 = arith.constant 0 : i32
    %c0_i32_1 = arith.constant 0 : i32
    return %c0_i32, %c0_i32_0 : i32, i32
  }
  func.func @transform_7(%arg0: i32) -> (i32, i32) {
    %c0_i32 = arith.constant 0 : i32
    %c0_i32_0 = arith.constant 0 : i32
    return %c0_i32, %arg0 : i32, i32
  }
}

</mosaic_0001>

<bundles_post_ra>
// kernel: tpu_custom_call.1
= control target key start
LH: loop header
LB: loop body
LE: loop exit
PB: predicated region body
PF: predicated region fallthrough
CT: control target
= control target key end

     0   :  { %vm57_vm0 = vcmask 130048   ;;  %v523_v4 = vmov 0   ;;  %s649_s0 = inlined_call_operand.vmem [shape: f32[16,128], index: 0, kind: input, shape index: {}]   ;;  %s650_s1 = inlined_call_operand.vmem [shape: f32[32,16], index: 1, kind: input, shape index: {}]   ;;  %s651_s2 = inlined_call_operand.vmem [shape: f32[32,1], index: 2, kind: input, shape index: {}]   ;;  %s652_s3 = inlined_call_operand.vmem [shape: f32[32,32], index: 3, kind: input, shape index: {}]   ;;  %s653_s4 = inlined_call_operand.vmem [shape: f32[32,1], index: 4, kind: input, shape index: {}]   ;;  %s654_s5 = inlined_call_operand.vmem [shape: f32[8,32], index: 5, kind: input, shape index: {}]   ;;  %s655_s6 = inlined_call_operand.vmem [shape: f32[8,1], index: 6, kind: input, shape index: {}]   ;;  %s656_s7 = inlined_call_operand.hbm [shape: f32[8,128], index: 7, kind: output, shape index: {}]  }
   0x1   :  { %v27_v0 = vld [vmem:[%s649_s0] sm:$0xff]  ;;  %v28_v1 = vld [vmem:[%s649_s0 + $0x8] sm:$0xff]  ;;  %477 = vset.pattern.permute.xlu0 %v523_v4  ;;  %478 = vset.pattern.permute.xlu1 %v523_v4  ;;  %v35_v6 = vld [vmem:[%s651_s2 + $0x10] sm:$0xff] }
   0x2   :  { %v29_v2 = vld [vmem:[%s650_s1] sm:$0xff]  ;;  %v454_v3 = vpack.c.bf16 %v28_v1, %v27_v0  ;;  %v30_v7 = vld [vmem:[%s650_s1 + $0x8] sm:$0xff]  ;;  %49 = vperm.xlu1 %478, %v35_v6   ;;  %v31_v9 = vld [vmem:[%s650_s1 + $0x10] sm:$0xff] }
   0x3   :  { %423 = vmatprep.mubr.msk.f32.mxu0 %vm57_vm0, %v29_v2  ;;  %v33_v5 = vld [vmem:[%s651_s2] sm:$0xff]  ;;  %v34_v8 = vld [vmem:[%s651_s2 + $0x8] sm:$0xff]  ;;  %v36_v10 = vld [vmem:[%s651_s2 + $0x18] sm:$0xff] }
   0x4   :  { %455 = vmatprep.subr.bf16.mxu0 %v454_v3  ;;  %39 = vperm.xlu0 %477, %v33_v5  }
   0x5   :  { %457 = vmatpush3.bf16.msra.mxu0 %v454_v3 }
   0x6   :  { %12 = vsyncpa [#allocation3], 0  ;;  %v32_v11 = vld [vmem:[%s650_s1 + $0x18] sm:$0xff]  ;;  %v163_v12 = vld [vmem:[%s653_s4] sm:$0xff]  ;;  %54 = vperm.xlu1 %478, %v36_v10   ;;  %vm187_vm1 = vcmask 261120   ;;  %v524_v39 = vmov 0.0|0.0  }
   0x7   :  { %v164_v13 = vld [vmem:[%s653_s4 + $0x8] sm:$0xff]  ;;  %v165_v14 = vld [vmem:[%s653_s4 + $0x10] sm:$0xff]  ;;  %v166_v15 = vld [vmem:[%s653_s4 + $0x18] sm:$0xff]  ;;  %466 = vmatprep.subr.bf16.mxu0 %v524_v39  ;;  %vm525_vm2 = vmmov 0   ;;  %v526_v40 = vmov 0.0   ;;  %s527_s11 = smov [#allocation2]  }
   0x8   :  { %424 = vmatmul.mubr.msk.f32.vlgmr.msra.gmra.mrb[0].mxu0 %vm57_vm0, %v30_v7  ;;  %44 = vperm.xlu0 %477, %v34_v8   ;;  %v290_v16 = vld [vmem:[%s655_s6] sm:$0xff]  ;;  %v160_v36 = vld [vmem:[%s652_s3 + $0x8] sm:$0xff]  ;;  %v161_v37 = vld [vmem:[%s652_s3 + $0x10] sm:$0xff]  ;;  %s382_s12 = sshll.u32 %s527_s11, 4  ;;  %s383_s12 = int_to_ptr.vmem [resolvable:$true] %s382_s12 }
   0x9   :  { %426 = vmatprep.mubr.msk.f32.mxu0 %vm57_vm0, %v31_v9  ;;  %v159_v17 = vld [vmem:[%s652_s3] sm:$0xff]  ;;  %v162_v38 = vld [vmem:[%s652_s3 + $0x18] sm:$0xff]  ;;  %s499_s13 = scalar_lea.vmem %s383_s12, 128  ;;  %p504_p1 = scmp.lt.s32.totalorder %s383_s12, %s383_s12 }
   0xa   :  { %174 = vperm.xlu1 %478, %v164_v13   ;;  %437 = vmatprep.mubr.msk.f32.mxu1 %vm187_vm1, %v159_v17  ;;  %v289_v59 = vld [vmem:[%s654_s5] sm:$0xff]  ;;  %p500_p0 = scmp.ne.s32.totalorder %s383_s12, %s499_s13  ;;  %p505_p2 = scmp.lt.s32.totalorder %s499_s13, %s499_s13 }
   0xc   :  { %427 = vmatmul.mubr.msk.f32.gmra.mrb[2].mxu0 %vm57_vm0, %v32_v11  ;;  %169 = vperm.xlu0 %477, %v163_v12   ;;  %p506_p3 = por %p505_p2, %p504_p1 }
   0xd   :  { %451 = vmatprep.mubr.msk.f32.mxu0 %vm525_vm2, %v526_v40 }
   0xe   :  { %184 = vperm.xlu1 %478, %v166_v15   ;;  %p507_p4 = pnand %p506_p3, %p500_p0 }
  0x10   :  { %179 = vperm.xlu0 %477, %v165_v14  }
  0x14   :  { %293 = vperm.xlu0 %477, %v290_v16  }
  0x81   :  { %v50_v19 = vpop.permute.xlu1 %49 }
  0x83   :  { %v40_v18 = vpop.permute.xlu0 %39 }
  0x85   :  { %v55_v25 = vpop.permute.xlu1 %54 }
  0x87   :  { %v45_v20 = vpop.permute.xlu0 %44 }
  0x89   :  { %v175_v41 = vpop.permute.xlu1 %174 }
  0x8b   :  { %v170_v42 = vpop.permute.xlu0 %169 }
  0x8d   :  { %v185_v47 = vpop.permute.xlu1 %184 }
  0x8f   :  { %v180_v49 = vpop.permute.xlu0 %179 }
  0x93   :  { %v294_v60 = vpop.permute.xlu0 %293 }
  0xdb   :  { %v425_v21 = vpop.f32.mrb[0].mxu0 }
  0xdc   :  { %v142_v22 = vadd.f32 %v425_v21, %v45_v20  ;;  %v136_v23 = vpop.f32.mrb[1].mxu0 }
  0xdd   :  { %v137_v24 = vadd.f32 %v136_v23, %v40_v18 }
  0xde   :  { %479 = vtanh.f32 %v142_v22 }
  0xdf   :  { %481 = vtanh.f32 %v137_v24  ;;  %v428_v26 = vpop.f32.mrb[2].mxu0 }
  0xe0   :  { %v152_v27 = vadd.f32 %v428_v26, %v55_v25  ;;  %v146_v28 = vpop.f32.mrb[3].mxu0 }
  0xe1   :  { %v147_v29 = vadd.f32 %v146_v28, %v50_v19 }
  0xe2   :  { %483 = vtanh.f32 %v152_v27 }
  0xe3   :  { %485 = vtanh.f32 %v147_v29 }
  0xe8   :  { %v480_v30 = vpop.eup %479 }
  0xe9   :  { %v482_v31 = vpop.eup %481 }
  0xea   :  { %v458_v32 = vpack.c.bf16 %v480_v30, %v482_v31 }
  0xec   :  { %v484_v33 = vpop.eup %483  ;;  %459 = vmatprep.subr.bf16.mxu1 %v458_v32 }
  0xed   :  { %v486_v34 = vpop.eup %485  ;;  %461 = vmatpush3.bf16.msra.mxu1 %v458_v32 }
  0xee   :  { %v462_v35 = vpack.c.bf16 %v484_v33, %v486_v34 }
  0xf0   :  { %463 = vmatprep.subr.bf16.mxu1 %v462_v35 }
  0xf1   :  { %465 = vmatpush3.bf16.msra.mxu1 %v462_v35 }
  0xf4   :  { %438 = vmatmul.mubr.msk.f32.vlgmr.msra.gmra.mrb[0].mxu1 %vm187_vm1, %v160_v36 }
  0xf5   :  { %440 = vmatprep.mubr.msk.f32.mxu1 %vm187_vm1, %v161_v37 }
  0xf8   :  { %441 = vmatmul.mubr.msk.f32.gmra.mrb[2].mxu1 %vm187_vm1, %v162_v38 }
 0x1c7   :  { %v439_v43 = vpop.f32.mrb[0].mxu1 }
 0x1c8   :  { %v272_v44 = vadd.f32 %v439_v43, %v175_v41  ;;  %v266_v45 = vpop.f32.mrb[1].mxu1 }
 0x1c9   :  { %v267_v46 = vadd.f32 %v266_v45, %v170_v42 }
 0x1ca   :  { %487 = vtanh.f32 %v272_v44 }
 0x1cb   :  { %489 = vtanh.f32 %v267_v46  ;;  %v442_v48 = vpop.f32.mrb[2].mxu1 }
 0x1cc   :  { %v282_v50 = vadd.f32 %v442_v48, %v185_v47  ;;  %v276_v51 = vpop.f32.mrb[3].mxu1 }
 0x1cd   :  { %v277_v52 = vadd.f32 %v276_v51, %v180_v49 }
 0x1ce   :  { %491 = vtanh.f32 %v282_v50 }
 0x1cf   :  { %493 = vtanh.f32 %v277_v52 }
 0x1d4   :  { %v488_v53 = vpop.eup %487 }
 0x1d5   :  { %v490_v54 = vpop.eup %489 }
 0x1d6   :  { %v467_v55 = vpack.c.bf16 %v488_v53, %v490_v54 }
 0x1d8   :  { %v492_v56 = vpop.eup %491  ;;  %468 = vmatpush3.bf16.msra.mxu0 %v467_v55 }
 0x1d9   :  { %v494_v57 = vpop.eup %493  ;;  %469 = vmatprep.subr.bf16.mxu0 %v524_v39 }
 0x1da   :  { %v470_v58 = vpack.c.bf16 %v492_v56, %v494_v57 }
 0x1dc   :  { %471 = vmatpush3.bf16.msra.mxu0 %v470_v58 }
 0x1df   :  { %452 = vmatmul.mubr.msk.f32.vlgmr.msra.gmra.mrb[4].mxu0 %vm187_vm1, %v289_v59 }
 0x2b2   :  { %v365_v61 = vpop.f32.mrb[4].mxu0 }
 0x2b3   :  { %v366_v62 = vadd.f32 %v365_v61, %v294_v60  ;;  %v453_v63 = vpop.f32.mrb[5].mxu0 }
 0x2b5   :  { %v399_v0 = vmul.f32 -1.442695, %v366_v62 }
 0x2b7   :  { %495 = vpow2.f32 %v399_v0 }
 0x2c1   :  { %v496_v1 = vpop.eup %495 }
 0x2c2   :  { %v372_v2 = vadd.f32 1.0, %v496_v1 }
 0x2c4   :  { %497 = vrcp.f32 %v372_v2 }
 0x2ce   :  { %v498_v3 = vpop.eup %497 }
 0x2cf   :  { %375 = vst [vmem:[#allocation2] sm:$0xff] %v498_v3 }
 0x2d0   :  { %510 = shalt.err (!%p507_p4)
}
 0x2d1   :  { %s511_s15 = scalar_lea.hbm %s656_s7, 128 }
 0x2d2   :  { %p512_p5 = scmp.ne.s32.totalorder %s656_s7, %s511_s15  ;;  %p515_p6 = scmp.lt.u32.totalorder %s511_s15, %s656_s7 }
 0x2d4   :  { %p517_p7 = pnand %p515_p6, %p512_p5 }
 0x2d6   :  { %520 = shalt.err (!%p517_p7)
}
 0x2d7   :  { %385 = dma.vmem_to_hbm [thread:$0]  %s383_s12, 128, %s656_s7, [#allocation3]  }
 0x2d8   :  { %521 = dma.done.wait [#allocation3], 128  }
 0x2d9   :  { %522 = vsyncadd [#allocation3], 4294967168 }
 0x2da   :  { %389 = vsyncpa [#allocation3], 1 }

</bundles_post_ra>
